<compile_context>
chip_gen: v7x
topology: tpu7x:2x2x1
jax: 0.10.0
libtpu: 0.0.40
codegen_flags: <defaults>
</compile_context>

<pallas_src>
import math

import jax
import jax.numpy as jnp
from jax import lax
from jax.experimental import pallas as pl
from jax.experimental.pallas import tpu as pltpu


def _elementwise_act(name, z):
    if name == "sigmoid":
        return jax.nn.sigmoid(z)
    if name == "tanh":
        return jnp.tanh(z)
    if name == "relu":
        return jnp.maximum(z, 0.0)
    if name == "leakyrelu":
        return jnp.where(z >= 0, z, 0.01 * z)
    if name == "elu":
        return jnp.where(z > 0, z, jnp.expm1(z))
    if name == "softplus":
        return jax.nn.softplus(z)
    if name == "softsign":
        return z / (1.0 + jnp.abs(z))
    raise ValueError(f"activation '{name}' not supported")


def _make_tconv_kernel(*, Kt, N, M_sp, c_in, c_out, Bt, gated, act_func,
                       align_mode, mm_dtype):
    """Build the kernel body.

    Per grid step (Bt batch elements packed into one slab):
      x_ref : (Bt, c_in, T*N)      f32   (cast to mm_dtype in VMEM)
      w_ref : (C_total, Kt*c_in)   mm    fused (Wp|Wq), Kt folded into K
      b_ref : (C_total, 1)         f32
      [aw_ref: (c_out, c_in) f32, ab_ref: (c_out, 1) f32]  iff align_mode=="conv"
      o_ref : (Bt, c_out, T_out*N)
    """

    def kernel(*refs):
        if align_mode == "conv":
            x_ref, w_ref, b_ref, aw_ref, ab_ref, o_ref = refs
        else:
            x_ref, w_ref, b_ref, o_ref = refs

        w = w_ref[...]                                   # hoisted out of Bt loop
        b = b_ref[...]

        for bt in range(Bt):
            x_f32 = x_ref[bt]                            # (c_in, T*N) f32
            x_res = x_f32[:, (Kt - 1) * N:]              # (c_in, M_sp) residual window

            # ---- Align residual, fused in-kernel (no HBM round trip) ----
            if align_mode == "same":
                x_in = x_res
            elif align_mode == "pad":
                x_in = jnp.concatenate(
                    [x_res, jnp.zeros((c_out - c_in, M_sp), jnp.float32)], axis=0)
            else:  # "conv": 1x1 channel-align conv as one extra dot on the slab
                x_in = jnp.dot(aw_ref[...], x_res,
                               preferred_element_type=jnp.float32) + ab_ref[...]

            # ---- causal conv: in-VMEM im2col (Kt folded into K) + ONE dot ----
            cols = jnp.concatenate(
                [x_f32[:, k * N: k * N + M_sp] for k in range(Kt)],
                axis=0).astype(mm_dtype)                 # (Kt*c_in, M_sp)
            acc = jnp.dot(w, cols, preferred_element_type=jnp.float32) + b

            # ---- f32 epilogue ----
            if gated:
                x_p = acc[:c_out] + x_in
                x_q = acc[c_out:]
                if act_func == "glu":
                    out = x_p * jax.nn.sigmoid(x_q)
                elif act_func == "gtu":
                    out = jnp.tanh(x_p) * jax.nn.sigmoid(x_q)
                else:
                    raise ValueError(f"gated activation '{act_func}' not defined")
            else:
                out = _elementwise_act(act_func, acc + x_in)

            o_ref[bt] = out.astype(o_ref.dtype)

    return kernel


def temporal_conv_layer(x, params, *, Kt, c_in, c_out, act_func,
                        enable_gated_act_func, use_bf16_matmul=True,
                        out_dtype=None):
    """x: (B, c_in, T, n_vertex) float32 (NCHW, like PyTorch)."""
    B, Ci, T, N = x.shape
    assert Ci == c_in
    gated = bool(enable_gated_act_func)
    if gated and act_func not in ("glu", "gtu"):
        raise ValueError(f"gated activation '{act_func}' not defined")
    if not gated and act_func == "linear":
        # TODO(synk): 'linear' act_func applies nn.Linear over n_vertex; not implemented here.
        raise NotImplementedError("act_func='linear' not implemented in the Pallas path")

    out_dtype = jnp.dtype(x.dtype if out_dtype is None else out_dtype)
    mm_dtype = jnp.bfloat16 if use_bf16_matmul else jnp.float32

    # Optional lane padding of n_vertex so per-tap slice offsets (k*N) are
    # 128-aligned (only worth it for large, non-aligned N like 207 / 325).
    N_eff = N
    if N % 128 != 0 and N >= 128:
        N_eff = pl.cdiv(N, 128) * 128
    if N_eff != N:
        x = jnp.pad(x, ((0, 0), (0, 0), (0, 0), (0, N_eff - N)))

    T_out = T - Kt + 1
    TN = T * N_eff
    M_sp = T_out * N_eff
    C_total = 2 * c_out if gated else c_out

    if c_in > c_out:
        align_mode = "conv"
    elif c_in < c_out:
        align_mode = "pad"
    else:
        align_mode = "same"

    # ---- weights: (C_total, c_in, Kt) -> fused, Kt-folded (C_total, Kt*c_in) ----
    conv_w = params["conv_w"]
    conv_b = params["conv_b"]
    assert conv_w.shape == (C_total, c_in, Kt), (conv_w.shape, C_total, c_in, Kt)
    w_flat = jnp.transpose(conv_w, (0, 2, 1)).reshape(C_total, Kt * c_in).astype(mm_dtype)
    b2 = conv_b.reshape(C_total, 1).astype(jnp.float32)

    # conv input: NCHW -> (B, c_in, T*N) free reshape; keep f32 (cast in-kernel)
    x2d = x.reshape(B, c_in, TN)
    if x2d.dtype != jnp.float32:
        x2d = x2d.astype(jnp.float32)

    # ---- batch packing: few, large DMAs for thin early layers ----
    out_item = out_dtype.itemsize
    per_batch_bytes = c_in * TN * 4 + c_out * M_sp * out_item
    max_bt = min(8, max(1, (512 << 10) // max(per_batch_bytes, 1)))
    if B >= 2:
        max_bt = min(max_bt, B // 2)     # keep >=2 grid steps for megacore (v7x)
    Bt = max(d for d in range(1, B + 1) if B % d == 0 and d <= max(max_bt, 1))
    grid = (B // Bt,)

    kernel = _make_tconv_kernel(Kt=Kt, N=N_eff, M_sp=M_sp, c_in=c_in, c_out=c_out,
                                Bt=Bt, gated=gated, act_func=act_func,
                                align_mode=align_mode, mm_dtype=mm_dtype)

    x_spec = pl.BlockSpec((Bt, c_in, TN), lambda g: (g, 0, 0))
    w_spec = pl.BlockSpec((C_total, Kt * c_in), lambda g: (0, 0))
    b_spec = pl.BlockSpec((C_total, 1), lambda g: (0, 0))
    out_spec = pl.BlockSpec((Bt, c_out, M_sp), lambda g: (g, 0, 0))

    args = [x2d, w_flat, b2]
    in_specs = [x_spec, w_spec, b_spec]
    if align_mode == "conv":
        aw = params["align_w"].astype(jnp.float32)                     # (c_out, c_in)
        ab = params["align_b"].reshape(c_out, 1).astype(jnp.float32)   # (c_out, 1)
        args += [aw, ab]
        in_specs += [pl.BlockSpec((c_out, c_in), lambda g: (0, 0)),
                     pl.BlockSpec((c_out, 1), lambda g: (0, 0))]

    # ---- VMEM budget: blocks (double-buffered) + weights + in-kernel temps ----
    mm_item = jnp.dtype(mm_dtype).itemsize
    block_in = Bt * c_in * TN * 4
    block_out = Bt * c_out * M_sp * out_item
    weights_b = C_total * (Kt * c_in * mm_item + 4)
    if align_mode == "conv":
        weights_b += c_out * (c_in + 1) * 4
    temps = (Kt * c_in * M_sp * (4 + mm_item)    # im2col slab (f32 concat + cast)
             + C_total * M_sp * 4                # f32 matmul accumulator
             + 3 * c_out * M_sp * 4)             # residual + epilogue temporaries
    vmem_bytes = 2 * (block_in + block_out + weights_b) + temps

    compiler_kwargs = {"dimension_semantics": ("parallel",)}
    if vmem_bytes > (16 << 20):
        try:
            cap = int(0.75 * pltpu.get_tpu_info().vmem_capacity_bytes)
        except Exception:
            cap = 96 << 20
        compiler_kwargs["vmem_limit_bytes"] = min(int(vmem_bytes) + (4 << 20), cap)
        # TODO(synk): if a slab still exceeds the cap (huge T*N on v7x's 64 MiB
        # VMEM), add a temporal-tile grid axis with a (Kt-1)-row halo via manual
        # make_async_copy instead of raising the limit further.

    out3 = pl.pallas_call(
        kernel,
        out_shape=jax.ShapeDtypeStruct((B, c_out, M_sp), out_dtype),
        grid_spec=pltpu.PrefetchScalarGridSpec(
            num_scalar_prefetch=0,
            grid=grid,
            in_specs=in_specs,
            out_specs=out_spec,
        ),
        compiler_params=pltpu.CompilerParams(**compiler_kwargs),
    )(*args)

    # (B, c_out, T_out*N_eff) -> NCHW; strip any lane padding.
    out4 = out3.reshape(B, c_out, T_out, N_eff)
    if N_eff != N:
        out4 = out4[:, :, :, :N]
    return out4


def _reference(x, params, *, Kt, c_in, c_out, act_func, gated):
    """Pure-JAX reference mirroring the PyTorch forward."""
    B, Ci, T, N = x.shape
    conv_w = params["conv_w"]
    conv_b = params["conv_b"]
    conv = lax.conv_general_dilated(
        x, conv_w[:, :, :, None], window_strides=(1, 1), padding="VALID",
        dimension_numbers=("NCHW", "OIHW", "NCHW")) + conv_b[None, :, None, None]
    if c_in > c_out:
        x_al = (jnp.einsum("oc,bctn->botn", params["align_w"], x)
                + params["align_b"][None, :, None, None])
    elif c_in < c_out:
        x_al = jnp.concatenate(
            [x, jnp.zeros((B, c_out - c_in, T, N), x.dtype)], axis=1)
    else:
        x_al = x
    x_in = x_al[:, :, Kt - 1:, :]
    if gated:
        x_p, x_q = conv[:, :c_out], conv[:, c_out:]
        if act_func == "glu":
            return (x_p + x_in) * jax.nn.sigmoid(x_q)
        return jnp.tanh(x_p + x_in) * jax.nn.sigmoid(x_q)
    return _elementwise_act(act_func, conv + x_in)


if __name__ == "__main__":
    key = jax.random.PRNGKey(0)
    keys = jax.random.split(key, 8)

    B, Kt, T, N = 2, 3, 16, 16
    T_out = T - Kt + 1

    # ---- Case A: c_in < c_out (zero-pad align), gated GLU ----
    c_in, c_out = 4, 8
    x = jax.random.normal(keys[0], (B, c_in, T, N), jnp.float32)
    bound = 1.0 / math.sqrt(c_in * Kt)
    conv_w_g = jax.random.uniform(keys[1], (2 * c_out, c_in, Kt), jnp.float32, -bound, bound)
    conv_b_g = jax.random.uniform(keys[2], (2 * c_out,), jnp.float32, -bound, bound)
    params_g = {"conv_w": conv_w_g, "conv_b": conv_b_g}

    out = jax.block_until_ready(temporal_conv_layer(
        x, params_g, Kt=Kt, c_in=c_in, c_out=c_out, act_func="glu",
        enable_gated_act_func=True, use_bf16_matmul=False))
    ref = _reference(x, params_g, Kt=Kt, c_in=c_in, c_out=c_out,
                     act_func="glu", gated=True)
    assert out.shape == (B, c_out, T_out, N), out.shape
    assert jnp.allclose(out, ref, atol=1e-5, rtol=1e-5), "f32 GLU mismatch vs reference"

    # bf16 MXU inputs + bf16 output (fast path): loose tolerance vs f32 reference
    out_bf = jax.block_until_ready(temporal_conv_layer(
        x, params_g, Kt=Kt, c_in=c_in, c_out=c_out, act_func="glu",
        enable_gated_act_func=True, use_bf16_matmul=True, out_dtype=jnp.bfloat16))
    assert out_bf.dtype == jnp.bfloat16
    assert jnp.allclose(out_bf.astype(jnp.float32), ref, atol=1e-1, rtol=1e-1), \
        "bf16 GLU mismatch vs reference"

    # non-gated elementwise path ('sigmoid'), f32: exact check
    params_p = {"conv_w": conv_w_g[:c_out], "conv_b": conv_b_g[:c_out]}
    out_s = jax.block_until_ready(temporal_conv_layer(
        x, params_p, Kt=Kt, c_in=c_in, c_out=c_out, act_func="sigmoid",
        enable_gated_act_func=False, use_bf16_matmul=False))
    ref_s = _reference(x, params_p, Kt=Kt, c_in=c_in, c_out=c_out,
                       act_func="sigmoid", gated=False)
    assert jnp.allclose(out_s, ref_s, atol=1e-5, rtol=1e-5), "sigmoid mismatch vs reference"

    # ---- Case B: c_in > c_out (1x1 align conv fused in-kernel), gated GTU ----
    c_in2, c_out2 = 8, 4
    x2 = jax.random.normal(keys[3], (B, c_in2, T, N), jnp.float32)
    bound2 = 1.0 / math.sqrt(c_in2 * Kt)
    conv_w2 = jax.random.uniform(keys[4], (2 * c_out2, c_in2, Kt), jnp.float32, -bound2, bound2)
    conv_b2 = jax.random.uniform(keys[5], (2 * c_out2,), jnp.float32, -bound2, bound2)
    ab_bound = 1.0 / math.sqrt(c_in2)
    align_w = jax.random.uniform(keys[6], (c_out2, c_in2), jnp.float32, -ab_bound, ab_bound)
    align_b = jax.random.uniform(keys[7], (c_out2,), jnp.float32, -ab_bound, ab_bound)
    params2 = {"conv_w": conv_w2, "conv_b": conv_b2,
               "align_w": align_w, "align_b": align_b}
    out2 = jax.block_until_ready(temporal_conv_layer(
        x2, params2, Kt=Kt, c_in=c_in2, c_out=c_out2, act_func="gtu",
        enable_gated_act_func=True, use_bf16_matmul=False))
    ref2 = _reference(x2, params2, Kt=Kt, c_in=c_in2, c_out=c_out2,
                      act_func="gtu", gated=True)
    assert jnp.allclose(out2, ref2, atol=1e-5, rtol=1e-5), "conv-align GTU mismatch"

    # ---- Case C: c_in == c_out (identity align), non-gated relu ----
    c3 = 8
    x3 = jax.random.normal(keys[3], (B, c3, T, N), jnp.float32)
    bound3 = 1.0 / math.sqrt(c3 * Kt)
    conv_w3 = jax.random.uniform(keys[4], (c3, c3, Kt), jnp.float32, -bound3, bound3)
    conv_b3 = jax.random.uniform(keys[5], (c3,), jnp.float32, -bound3, bound3)
    params3 = {"conv_w": conv_w3, "conv_b": conv_b3}
    out3 = jax.block_until_ready(temporal_conv_layer(
        x3, params3, Kt=Kt, c_in=c3, c_out=c3, act_func="relu",
        enable_gated_act_func=False, use_bf16_matmul=False))
    ref3 = _reference(x3, params3, Kt=Kt, c_in=c3, c_out=c3,
                      act_func="relu", gated=False)
    assert jnp.allclose(out3, ref3, atol=1e-5, rtol=1e-5), "identity-align relu mismatch"

    print("KERNEL_OK")
</pallas_src>

<mosaic_0001>
module attributes {stable_mosaic.version = 11 : i64} {
  func.func @kernel(%arg0: i32, %arg1: memref<1x4x256xf32, #tpu.memory_space<vmem>>, %arg2: memref<16x12xf32, #tpu.memory_space<vmem>>, %arg3: memref<16x1xf32, #tpu.memory_space<vmem>>, %arg4: memref<1x8x224xf32, #tpu.memory_space<vmem>>) attributes {dimension_semantics = [#tpu.dimension_semantics<parallel>], iteration_bounds = array<i64: 2>, scalar_prefetch = 0 : i64, scratch_operands = 0 : i64, tpu.core_type = #tpu.core_type<tc>, window_params = [{transform_indices = @transform_0, window_bounds = array<i64: 1, 4, 256>}, {pipeline_mode = #tpu.pipeline_mode<synchronous>, transform_indices = @transform_1, window_bounds = array<i64: 16, 12>}, {pipeline_mode = #tpu.pipeline_mode<synchronous>, transform_indices = @transform_2, window_bounds = array<i64: 16, 1>}, {transform_indices = @transform_3, window_bounds = array<i64: 1, 8, 224>}]} {
    %c0 = arith.constant 0 : index
    %c0_0 = arith.constant 0 : index
    %0 = vector.load %arg2[%c0, %c0_0] : memref<16x12xf32, #tpu.memory_space<vmem>>, vector<16x12xf32>
    %c0_1 = arith.constant 0 : index
    %c0_2 = arith.constant 0 : index
    %1 = vector.load %arg3[%c0_1, %c0_2] : memref<16x1xf32, #tpu.memory_space<vmem>>, vector<16x1xf32>
    %c0_3 = arith.constant 0 : index
    %c0_4 = arith.constant 0 : index
    %c0_5 = arith.constant 0 : index
    %2 = vector.load %arg1[%c0_3, %c0_4, %c0_5] : memref<1x4x256xf32, #tpu.memory_space<vmem>>, vector<1x4x256xf32>
    %3 = vector.shape_cast %2 : vector<1x4x256xf32> to vector<4x256xf32>
    %4 = vector.extract_strided_slice %3 {offsets = [0, 32], sizes = [4, 224], strides = [1, 1]} : vector<4x256xf32> to vector<4x224xf32>
    %cst = arith.constant 0.000000e+00 : f32
    %5 = vector.broadcast %cst : f32 to vector<4x224xf32>
    %6 = tpu.concatenate %4, %5 in 0 : vector<4x224xf32>, vector<4x224xf32> -> vector<8x224xf32>
    %7 = vector.extract_strided_slice %3 {offsets = [0, 0], sizes = [4, 224], strides = [1, 1]} : vector<4x256xf32> to vector<4x224xf32>
    %8 = vector.extract_strided_slice %3 {offsets = [0, 16], sizes = [4, 224], strides = [1, 1]} : vector<4x256xf32> to vector<4x224xf32>
    %9 = vector.extract_strided_slice %3 {offsets = [0, 32], sizes = [4, 224], strides = [1, 1]} : vector<4x256xf32> to vector<4x224xf32>
    %10 = tpu.concatenate %7, %8, %9 in 0 : vector<4x224xf32>, vector<4x224xf32>, vector<4x224xf32> -> vector<12x224xf32>
    %cst_6 = arith.constant dense<0.000000e+00> : vector<16x224xf32>
    %11 = tpu.matmul %0, %10, %cst_6 {dimension_numbers = #tpu.dot_dimension_numbers<[1], [0], [0], [1], [0, 0, 1, 1], [], []>} : vector<16x12xf32>, vector<12x224xf32>, vector<16x224xf32> -> vector<16x224xf32>
    %12 = vector.broadcast %1 : vector<16x1xf32> to vector<16x224xf32>
    %13 = arith.addf %11, %12 : vector<16x224xf32>
    %14 = vector.extract_strided_slice %13 {offsets = [0, 0], sizes = [8, 224], strides = [1, 1]} : vector<16x224xf32> to vector<8x224xf32>
    %15 = arith.addf %14, %6 : vector<8x224xf32>
    %16 = vector.extract_strided_slice %13 {offsets = [8, 0], sizes = [8, 224], strides = [1, 1]} : vector<16x224xf32> to vector<8x224xf32>
    %17 = arith.negf %16 : vector<8x224xf32>
    %18 = math.exp %17 : vector<8x224xf32>
    %cst_7 = arith.constant 1.000000e+00 : f32
    %19 = vector.broadcast %cst_7 : f32 to vector<8x224xf32>
    %20 = arith.addf %19, %18 : vector<8x224xf32>
    %21 = arith.divf %19, %20 : vector<8x224xf32>
    %22 = arith.mulf %15, %21 : vector<8x224xf32>
    %c0_8 = arith.constant 0 : index
    %c0_9 = arith.constant 0 : index
    %c0_10 = arith.constant 0 : index
    %23 = vector.load %arg4[%c0_8, %c0_9, %c0_10] : memref<1x8x224xf32, #tpu.memory_space<vmem>>, vector<1x8x224xf32>
    %24 = vector.shape_cast %23 : vector<1x8x224xf32> to vector<8x224xf32>
    %25 = vector.shape_cast %22 : vector<8x224xf32> to vector<1x8x224xf32>
    tpu.vector_store %arg4[%c0_8, %c0_9, %c0_10], %25 {strides = array<i32>} : memref<1x8x224xf32, #tpu.memory_space<vmem>>, vector<1x8x224xf32>,
    return
  }
  func.func @transform_0(%arg0: i32) -> (i32, i32, i32) {
    %c0_i32 = arith.constant 0 : i32
    %c0_i32_0 = arith.constant 0 : i32
    %c0_i32_1 = arith.constant 0 : i32
    return %arg0, %c0_i32, %c0_i32_0 : i32, i32, i32
  }
  func.func @transform_1(%arg0: i32) -> (i32, i32) {
    %c0_i32 = arith.constant 0 : i32
    %c0_i32_0 = arith.constant 0 : i32
    %c0_i32_1 = arith.constant 0 : i32
    return %c0_i32, %c0_i32_0 : i32, i32
  }
  func.func @transform_2(%arg0: i32) -> (i32, i32) {
    %c0_i32 = arith.constant 0 : i32
    %c0_i32_0 = arith.constant 0 : i32
    %c0_i32_1 = arith.constant 0 : i32
    return %c0_i32, %c0_i32_0 : i32, i32
  }
  func.func @transform_3(%arg0: i32) -> (i32, i32, i32) {
    %c0_i32 = arith.constant 0 : i32
    %c0_i32_0 = arith.constant 0 : i32
    %c0_i32_1 = arith.constant 0 : i32
    return %arg0, %c0_i32, %c0_i32_0 : i32, i32, i32
  }
}

</mosaic_0001>

<bundles_post_ra>
// kernel: tpu_custom_call.1
= control target key start
LH: loop header
LB: loop body
LE: loop exit
PB: predicated region body
PF: predicated region fallthrough
CT: control target
= control target key end

     0   :  { %8 = vsyncpa [#allocation3], 0  ;;  %s806_s0 = inlined_call_operand.vmem [shape: f32[2,4,256], index: 0, kind: input, shape index: {}]   ;;  %s807_s1 = inlined_call_operand.hbm [shape: f32[16,12], index: 1, kind: input, shape index: {}]   ;;  %s808_s2 = inlined_call_operand.vmem [shape: f32[16,1], index: 2, kind: input, shape index: {}]   ;;  %s809_s3 = inlined_call_operand.hbm [shape: f32[2,8,224], index: 3, kind: output, shape index: {}]  }
   0x1   :  { %9 = vsyncpa [#allocation4], 0 }
   0x2   :  { %11 = vsyncpa [#allocation4 + $0x1], 0  ;;  %s657_s12 = smov 0   ;;  %s659_s13 = smov 0  }
   0x3   :  { %s661_s14 = smov 0   ;;  %s663_s15 = smov 0  }
   0x4 LB: > { %s678_s16 = sadd.s32 4294967295, %s626_s15   ;;  %s423_s17 = sadd.s32 4294967294, %s626_s15   ;;  %s626_s15 = sphi %s663_s15, %s825_s15   ;;  %s622_s14 = sphi %s661_s14, %s824_s14   ;;  %s618_s13 = sphi %s659_s13, %s823_s13   ;;  %s614_s12 = sphi %s657_s12, %s822_s12  }
   0x5   : > { %s682_s18 = sadd.s32 1, %s626_s15   ;;  %s92_s19 = sadd.s32 1, %s622_s14 }
   0x6   : > { %s89_s20 = ssub.s32 %s626_s15, %s682_s18  ;;  %p102_p0 = scmp.ne.s32.totalorder %s622_s14, %s618_s13 }
   0x7   : > { %p90_p1 = scmp.eq.s32.totalorder %s89_s20, 0  ;;  %p103_p2 = scmp.eq.s32.totalorder %s678_s16, 1 }
   0x8   : > { %p108_p3 = scmp.ne.s32.totalorder %s618_s13, %s614_s12  ;;  %p109_p4 = scmp.eq.s32.totalorder %s423_s17, 1 }
   0x9   : > { %s693_s21 = scalar_select %p90_p1, %s622_s14, %s92_s19  }
   0xa   : > { %p695_p5 = por %p103_p2, %p102_p0  ;;  %p699_p6 = por %p109_p4, %p108_p3 }
   0xb   : > { %p424_p7 = scmp.ge.s32.totalorder %s626_s15, 1  ;;  %p116_p8 = scmp.lt.s32.totalorder %s626_s15, 3 }
   0xc   : > { %s813_s22 = scalar_select %p695_p5, 1, 0 }
   0xd   : > { %s814_s23 = scalar_select %p699_p6, 1, 0 }
   0xe   : > { %p810_p9 = scmp.eq.s32.totalorder %s678_s16, 0  ;;  %p706_p10 = pnand %p424_p7, %p116_p8 }
   0xf   : > { %s628_s25 = smov [#allocation2]   ;;  %s532_s30 = scalar_lea.hbm %s807_s1, 256 }
  0x10   : > { %s815_s24 = scalar_select %p706_p10, 1, 0 }
  0x11   : > { %s128_s26 = sshll.u32 %s628_s25, 4  ;;  %p459_p11 = pneg %p706_p10  ;;  %s129_s26 = int_to_ptr.vmem [resolvable:$true] %s128_s26 }
  0x12   : > { %p533_p13 = scmp.ne.s32.totalorder %s807_s1, %s532_s30  ;;  %p539_p3 = scmp.lt.u32.totalorder %s532_s30, %s807_s1 }
  0x13   : > { %p714_p12 = pnand %p810_p9, %p459_p11 }
  0x15   : > { %p534_p0 = pneg %p714_p12 }
  0x17   : > { %p535_p1 = pnand %p534_p0, %p533_p13 }
  0x19   : > { %p536_p2 = pneg %p535_p1 }
  0x1b   : > { %p541_p4 = pnand %p539_p3, %p536_p2 }
  0x1d   : > { %544 = shalt.err (!%p541_p4)
}
  0x1e   : > { %s545_s8 = scalar_lea.vmem %s129_s26, 256  ;;  %p553_p9 = scmp.lt.s32.totalorder %s129_s26, %s129_s26 }
  0x1f   : > { %p546_p7 = scmp.ne.s32.totalorder %s129_s26, %s545_s8  ;;  %p554_p6 = scmp.lt.s32.totalorder %s545_s8, %s545_s8 }
  0x21   : > { %p548_p8 = pnand %p546_p7, %p534_p0  ;;  %p555_p5 = por %p554_p6, %p553_p9 }
  0x23   : > { %p549_p11 = pneg %p548_p8 }
  0x25   : > { %p556_p10 = pnand %p555_p5, %p549_p11 }
  0x27   : > { %559 = shalt.err (!%p556_p10)
}
  0x28   : > { %s629_s9 = smov 128   ;;  %s630_s10 = smov 8  }
  0x29   : > { %462 = dma.hbm_to_vmem [thread:$0]  (!%p714_p12), %s807_s1, 256, %s129_s26, [#allocation3], %s629_s9, %s629_s9, %s630_s10  }
  0x2a   : > { %p817_p13 = scmp.ne.s32.totalorder %s815_s24, 0 }
  0x2b   : > { %p818_p1 = scmp.eq.s32.totalorder (!%p817_p13), %s678_s16, 0 }
  0x2c   : > { %155 = sbr.rel (%p817_p13) target bundleno = 447 (0x1bf), region = 32 }
  0x33   : > { %605 = dma.done.wait (%p818_p1), [#allocation3], 256   ;;  %p819_p0 = pmov %p818_p1 }
  0x34   : > { %p179_p5 = scmp.lt.s32.totalorder %s678_s16, 1  ;;  %v631_v3 = vmov 0.0   ;;  %v187_v5 = vld [vmem:[%s808_s2 + $0x8] sm:$0xff]  ;;  %s632_s29 = smov 112   ;;  %v633_v7 = vmov 0   ;;  %v186_v8 = vld [vmem:[%s808_s2] sm:$0xff] }
  0x35   : > { %607 = vsyncadd (%p819_p0), [#allocation3], 4294967040  ;;  %297 = vmatprep.mubr.f32.mxu0 %v631_v3  ;;  %303 = vmatprep.mubr.f32.mxu1 %v631_v3  ;;  %s634_s5 = smov 96   ;;  %vm192_vm0 = vcmask 1043456   ;;  %vm200_vm1 = vcmask 916480   ;;  %vm208_vm2 = vcmask 785408  }
  0x36   : > { %s180_s19 = scalar_select %p179_p5, %s678_s16, 1  ;;  %520 = vset.pattern.permute.xlu1 %v633_v7  ;;  %521 = vset.pattern.permute.xlu0 %v633_v7  ;;  %vm635_vm3 = vmmov 1   ;;  %v184_v23 = vld [vmem:[#allocation2] sm:$0xff]  ;;  %vm222_vm5 = vcmask 97280   ;;  %v185_v24 = vld [vmem:[#allocation2 + $0x8] sm:$0xff] }
  0x37   : > { %219 = vperm.xlu1 %520, %v187_v5   ;;  %vm446_vm4 = vmpackc.low %vm192_vm0, %vm635_vm3  ;;  %s176_s6 = sand.u32 1, %s618_s13   ;;  %s444_s8 = sshll.u32 %s678_s16, 8 }
  0x38   : > { %s443_s20 = sshll.u32 %s180_s19, 3  ;;  %s429_s7 = sshll.u32 %s176_s6, 4 }
  0x39   : > { %s183_s28 = scalar_lea.vmem %s806_s0, %s443_s20  ;;  %s178_s9 = scalar_lea.vmem [#allocation5], %s429_s7 }
  0x3a   : > { %v188_v0 = vld [vmem:[%s183_s28] sm:$0xff]  ;;  %s352_s10 = sshll.u32 %s178_s9, 4  ;;  %s763_s19 = scalar_lea.hbm %s809_s3, %s444_s8  ;;  %s765_s10 = int_to_ptr.vmem [resolvable:$true] %s352_s10 }
  0x3b   : > { %v195_v1 = vcombine.low %v188_v0, %v188_v0  ;;  %v190_v2 = vcombine.high %v188_v0, %v188_v0  ;;  %214 = vperm.xlu1 %520, %v186_v8   ;;  %v193_v9 = vsel %vm192_vm0, %v188_v0, 0.0  ;;  %s338_s16 = scalar_lea.sflag [#allocation4], %s176_s6  ;;  %s560_s20 = scalar_lea.vmem %s765_s10, 256 }
  0x3c   : > { %p561_p6 = scmp.ne.s32.totalorder %s765_s10, %s560_s20  ;;  %p820_p9 = scmp.ne.s32.totalorder %s813_s22, 0 }
  0x3d   : > { %v510_v4 = vpack.i.bf16 %v188_v0, %v195_v1  ;;  %v515_v6 = vpack.i.bf16 %v190_v2, %v188_v0  ;;  %v194_v10 = vsel %vm192_vm0, %v190_v2, 0.0  ;;  %s636_s25 = smov [#allocation5]  }
  0x3e   : > { %p562_p10 = pnand %p561_p6, %p820_p9  ;;  %s564_s27 = sshll.u32 %s636_s25, 4  ;;  %s565_s27 = int_to_ptr.vmem [resolvable:$false] %s564_s27 }
  0x3f   : > { %511 = vrot.lane.b32.xlu0 %v510_v4, %s632_s29  ;;  %314 = vrot.lane.b32.xlu1 %v194_v10, %s634_s5  ;;  %s566_s28 = scalar_lea.vmem %s565_s27, 512  ;;  %p567_p2 = scmp.lt.s32.totalorder %s765_s10, %s565_s27 }
  0x40   : > { %p563_p12 = pneg %p562_p10  ;;  %p568_p3 = scmp.lt.s32.totalorder %s566_s28, %s560_s20 }
  0x42   : > { %p569_p4 = por %p568_p3, %p567_p2 }
  0x43   : > { %516 = vrot.lane.b32.xlu0 %v515_v6, %s634_s5 }
  0x44   : > { %p570_p7 = pnand %p569_p4, %p563_p12 }
  0x47   : > { %312 = vrot.lane.b32.xlu0 %v193_v9, %s634_s5 }
  0xb1   : > { %v512_v11 = vpop.permute.xlu0 %511 }
  0xb2   : > { %v514_v12 = vunpack.i.h.bf16 %v512_v11  ;;  %v513_v13 = vunpack.i.l.bf16 %v512_v11 }
  0xb4   : > { %v201_v14 = vsel %vm200_vm1, %v513_v13, %v514_v12  ;;  %v211_v18 = vsel %vm192_vm0, %v190_v2, %v514_v12 }
  0xb5   : > { %v517_v15 = vpop.permute.xlu0 %516  ;;  %v210_v21 = vsel %vm192_vm0, %v188_v0, %v201_v14 }
  0xb6   : > { %v519_v16 = vunpack.i.h.bf16 %v517_v15  ;;  %v518_v17 = vunpack.i.l.bf16 %v517_v15  ;;  %v220_v25 = vpop.permute.xlu1 %219 }
  0xb8   : > { %v445_v19 = vpack.c.bf16 %v519_v16, %v211_v18  ;;  %v209_v20 = vsel %vm208_vm2, %v518_v17, %v519_v16 }
  0xb9   : > { %v448_v22 = vpack.c.bf16 %v209_v20, %v210_v21  ;;  %v313_v39 = vpop.permute.xlu0 %312 }
  0xba   : > { %447 = vmatprep.subr.msk.bf16.mxu0 %vm446_vm4, %v445_v19  ;;  %451 = vmatprep.subr.msk.bf16.mxu1 %vm446_vm4, %v445_v19  ;;  %v215_v35 = vpop.permute.xlu1 %214 }
  0xbb   : > { %450 = vmatpush1.bf16.msk.msra.mxu0 %vm446_vm4, %v448_v22  ;;  %452 = vmatpush1.bf16.msk.msra.mxu1 %vm446_vm4, %v448_v22 }
  0xbe   : > { %434 = vmatmul.mubr.msk.f32.vlgmr.msra.gmra.mrb[0].mxu0 %vm222_vm5, %v184_v23  ;;  %435 = vmatmul.mubr.msk.f32.vlgmr.msra.gmra.mrb[0].mxu1 %vm222_vm5, %v185_v24  ;;  %v315_v40 = vpop.permute.xlu1 %314 }
  0xbf   : > { %v316_v43 = vsel %vm208_vm2, %v313_v39, %v315_v40 }
 0x191   : > { %v299_v26 = vpop.f32.mrb[0].mxu0  ;;  %v305_v27 = vpop.f32.mrb[0].mxu1 }
 0x192   : > { %v306_v28 = vadd.f32 %v305_v27, %v220_v25  ;;  %v301_v29 = vpop.f32.mrb[1].mxu0  ;;  %v307_v30 = vpop.f32.mrb[1].mxu1  ;;  %v300_v41 = vadd.f32 %v299_v26, %v215_v35 }
 0x193   : > { %v308_v31 = vadd.f32 %v307_v30, %v220_v25  ;;  %v302_v42 = vadd.f32 %v301_v29, %v215_v35 }
 0x194   : > { %v436_v32 = vmul.f32 -1.442695, %v306_v28  ;;  %v319_v44 = vadd.f32 %v316_v43, %v300_v41 }
 0x195   : > { %v437_v33 = vmul.f32 -1.442695, %v308_v31  ;;  %v320_v46 = vadd.f32 %v315_v40, %v302_v42 }
 0x196   : > { %524 = vpow2.f32 %v436_v32 }
 0x197   : > { %526 = vpow2.f32 %v437_v33 }
 0x1a0   : > { %v525_v34 = vpop.eup %524 }
 0x1a1   : > { %v527_v36 = vpop.eup %526  ;;  %v327_v37 = vadd.f32 1.0, %v525_v34 }
 0x1a2   : > { %v328_v38 = vadd.f32 1.0, %v527_v36 }
 0x1a3   : > { %528 = vrcp.f32 %v327_v37 }
 0x1a4   : > { %530 = vrcp.f32 %v328_v38 }
 0x1ad   : > { %v529_v45 = vpop.eup %528 }
 0x1ae   : > { %v531_v47 = vpop.eup %530  ;;  %v333_v48 = vmul.f32 %v529_v45, %v319_v44 }
 0x1af   : > { %v334_v49 = vmul.f32 %v531_v47, %v320_v46 }
 0x1b0   : > { %335 = vst [vmem:[%s178_s9] sm:$0xff] %v333_v48 }
 0x1b1   : > { %336 = vst.msk [vmem:[%s178_s9 + $0x8] sm:$0xff] %vm208_vm2, %v334_v49 }
 0x1b2   : > { %573 = shalt.err (!%p570_p7)
}
 0x1b3   : > { %s574_s24 = scalar_lea.hbm %s763_s19, 256  ;;  %s578_s30 = scalar_lea.hbm %s809_s3, 512 }
 0x1b4   : > { %p575_p8 = scmp.ne.s32.totalorder %s763_s19, %s574_s24  ;;  %p579_p1 = scmp.lt.u32.totalorder %s763_s19, %s809_s3 }
 0x1b5   : > { %p580_p0 = scmp.lt.u32.totalorder %s578_s30, %s574_s24  ;;  %p582_p6 = scmp.lt.u32.totalorder %s574_s24, %s763_s19 }
 0x1b6   : > { %p576_p11 = pnand %p575_p8, %p820_p9 }
 0x1b7   : > { %p581_p5 = por %p580_p0, %p579_p1 }
 0x1b8   : > { %p577_p13 = pneg %p576_p11 }
 0x1b9   : > { %p583_p10 = por %p582_p6, %p581_p5 }
 0x1bb   : > { %p584_p12 = pnand %p583_p10, %p577_p13 }
 0x1bd   : > { %587 = shalt.err (!%p584_p12)
}
 0x1be   : > { %457 = dma.vmem_to_hbm [thread:$0]  (%p820_p9), %s765_s10, 256, %s763_s19, %s338_s16  }
 0x1bf PF: > { %p469_p2 = scmp.ge.s32.totalorder %s626_s15, 2  ;;  %s364_s6 = sand.u32 1, %s614_s12  }
 0x1c0   : > { %p821_p3 = scmp.ne.s32.totalorder %s814_s23, 0  ;;  %s365_s7 = scalar_lea.sflag [#allocation4], %s364_s6 }
 0x1c2   : > { %p464_p4 = pnand %p469_p2, %p821_p3 }
 0x1c4   : > { %609 = dma.done.wait (!%p464_p4), %s365_s7, 256  }
 0x1c5   : > { %611 = vsyncadd (!%p464_p4), %s365_s7, 4294967040  ;;  %p14_p7 = scmp.ge.s32.totalorder %s682_s18, 4   ;;  %s822_s12 = smov %s618_s13 }
 0x1c6   : > { %s823_s13 = smov %s622_s14  ;;  %s824_s14 = smov %s693_s21 }
 0x1c7   : > { %s825_s15 = smov %s682_s18  ;;  %16 = sbr.rel (!%p14_p7) target bundleno = 4 (0x4), region = 72 }
 0x1ce   :  { %370 = vsyncpa [#allocation3], 1 }
 0x1cf   :  { %372 = vsyncpa [#allocation3 + $0x1], 1 }
 0x1d0   :  { %373 = vsyncpa [#allocation4], 1 }
 0x1d1   :  { %375 = vsyncpa [#allocation4 + $0x1], 1 }

</bundles_post_ra>
